<compile_context>
chip_gen: v6e
topology: v6e:2x2x1
jax: 0.10.0
libtpu: 0.0.40
codegen_flags: <defaults>
</compile_context>

<pallas_src>
import functools

import jax
import jax.numpy as jnp
from jax.experimental import pallas as pl
from jax.experimental.pallas import tpu as pltpu

D_IN, D_H, D_OUT = 50, 200, 30
D_OUT_PAD = 128  # lane-dense padded output width (sliced back to 30 outside)


def _round_up(n, m):
    return ((n + m - 1) // m) * m


def _default_elem_dtype():
    """bf16 element-wise (bias/ReLU) on v6e/v7x; f32 on v5e (no bf16 VALU)."""
    try:
        kind = jax.devices()[0].device_kind.lower()
    except Exception:
        return jnp.bfloat16
    if "v5 lite" in kind or "v5lite" in kind or "v5e" in kind:
        return jnp.float32
    return jnp.bfloat16


def _net50_kernel(x_ref,
                  w1_ref, b1_ref,
                  w2_ref, b2_ref,
                  w3_ref, b3_ref,
                  w4_ref, b4_ref,
                  o_ref, *, elem_dtype):
    # Matmuls: bf16 inputs, f32 MXU accumulation.
    # Bias + ReLU: elem_dtype on the VPU (bf16 on v6e/v7x, f32 on v5e).
    def bias_relu(acc_f32, b_ref):
        h = acc_f32.astype(elem_dtype) + b_ref[...]
        return jnp.maximum(h, 0.0).astype(jnp.bfloat16)

    x = x_ref[...].astype(jnp.bfloat16)

    h = bias_relu(
        jnp.dot(x, w1_ref[...], preferred_element_type=jnp.float32), b1_ref)
    h = bias_relu(
        jnp.dot(h, w2_ref[...], preferred_element_type=jnp.float32), b2_ref)
    h = bias_relu(
        jnp.dot(h, w3_ref[...], preferred_element_type=jnp.float32), b3_ref)

    out = jnp.dot(h, w4_ref[...], preferred_element_type=jnp.float32)
    o_ref[...] = (out.astype(elem_dtype) + b4_ref[...]).astype(o_ref.dtype)


def prepare_params(params, elem_dtype=None):
    """One-time param prep: bf16 weights, biases in the element-wise compute
    dtype, and the last layer zero-padded from 30 to 128 output columns so the
    kernel's final store is lane-dense."""
    if elem_dtype is None:
        elem_dtype = _default_elem_dtype()
    w4 = jnp.zeros((D_H, D_OUT_PAD), jnp.float32).at[:, :D_OUT].set(params["w4"])
    b4 = jnp.zeros((1, D_OUT_PAD), jnp.float32).at[:, :D_OUT].set(params["b4"])
    return dict(
        w1=params["w1"].astype(jnp.bfloat16),
        b1=params["b1"].astype(elem_dtype),
        w2=params["w2"].astype(jnp.bfloat16),
        b2=params["b2"].astype(elem_dtype),
        w3=params["w3"].astype(jnp.bfloat16),
        b3=params["b3"].astype(elem_dtype),
        w4=w4.astype(jnp.bfloat16),
        b4=b4.astype(elem_dtype),
    )


@functools.partial(jax.jit, static_argnames=("max_batch_tile",))
def net50_forward_padded(x, prepped, *, max_batch_tile=4096):
    """x: (B, 50). Returns (round_up(B, tb), 128) bf16 padded output block.

    Rows >= B and columns >= 30 are padding; consumers that can fuse the slice
    should use this entry point directly (no post-kernel relayout copy).
    """
    B = x.shape[0]
    # Batch tile: multiple of 16 (bf16 sublane packing), capped at 4096 so the
    # per-step working set (~15-20 MiB with double-buffered x/out tiles, the
    # resident weights, and the (TB, 200) intermediates) stays well inside the
    # 40 MiB scoped VMEM limit below and v7x's 64 MiB physical VMEM.
    tb = min(max_batch_tile, _round_up(max(B, 1), 16))
    tb = _round_up(tb, 16)
    bp = _round_up(B, tb)

    # No full-array pad/cast pass: stream x in its own dtype (cast to bf16
    # inside the kernel) and only append a zero tail when B % tb != 0.
    if bp != B:
        x_in = jnp.concatenate(
            [x, jnp.zeros((bp - B, D_IN), x.dtype)], axis=0)
    else:
        x_in = x

    elem_dtype = prepped["b1"].dtype
    kernel = functools.partial(_net50_kernel, elem_dtype=elem_dtype)

    def const(shape):
        # Weights/biases: same block every step -> loaded once, VMEM-resident.
        return pl.BlockSpec(shape, lambda i: (0, 0))

    grid = (bp // tb,)

    return pl.pallas_call(
        kernel,
        out_shape=jax.ShapeDtypeStruct((bp, D_OUT_PAD), jnp.bfloat16),
        grid=grid,
        in_specs=[
            pl.BlockSpec((tb, D_IN), lambda i: (i, 0)),  # streamed batch tile
            const((D_IN, D_H)), const((1, D_H)),
            const((D_H, D_H)), const((1, D_H)),
            const((D_H, D_H)), const((1, D_H)),
            const((D_H, D_OUT_PAD)), const((1, D_OUT_PAD)),
        ],
        out_specs=pl.BlockSpec((tb, D_OUT_PAD), lambda i: (i, 0)),
        compiler_params=pltpu.CompilerParams(
            dimension_semantics=("parallel",),   # megacore sharding on v7x
            vmem_limit_bytes=40 * 1024 * 1024,   # > v5e's 16 MiB default scope
        ),
    )(x_in,
      prepped["w1"], prepped["b1"],
      prepped["w2"], prepped["b2"],
      prepped["w3"], prepped["b3"],
      prepped["w4"], prepped["b4"])


@functools.partial(jax.jit, static_argnames=("max_batch_tile",))
def net50_forward(x, prepped, *, max_batch_tile=4096):
    """Module-faithful interface: (B, 50) f32 -> (B, 30) f32."""
    out_padded = net50_forward_padded(x, prepped, max_batch_tile=max_batch_tile)
    # Single small slice+upcast (reads bf16, writes (B,30) f32); consumers that
    # want zero extra passes should use net50_forward_padded instead.
    return out_padded[:x.shape[0], :D_OUT].astype(jnp.float32)


def init_params(key):
    """Deterministic synthetic init (uniform, PyTorch-Linear-like scale).
    Weights stored as (in, out) so the kernel computes y = x @ W + b."""
    dims = [(D_IN, D_H), (D_H, D_H), (D_H, D_H), (D_H, D_OUT)]
    params = {}
    for i, (fan_in, fan_out) in enumerate(dims, start=1):
        key, kw, kb = jax.random.split(key, 3)
        bound = 1.0 / jnp.sqrt(fan_in)
        params[f"w{i}"] = jax.random.uniform(
            kw, (fan_in, fan_out), jnp.float32, -bound, bound)
        params[f"b{i}"] = jax.random.uniform(
            kb, (1, fan_out), jnp.float32, -bound, bound)
    return params


def net50_reference(x, params):
    h = jnp.maximum(x @ params["w1"] + params["b1"], 0.0)
    h = jnp.maximum(h @ params["w2"] + params["b2"], 0.0)
    h = jnp.maximum(h @ params["w3"] + params["b3"], 0.0)
    return h @ params["w4"] + params["b4"]


if __name__ == "__main__":
    key = jax.random.PRNGKey(0)
    key, kx = jax.random.split(key)

    batch = 8
    x = jax.random.normal(kx, (batch, D_IN), jnp.float32)
    params = init_params(key)
    prepped = prepare_params(params)

    out = net50_forward(x, prepped)
    out = jax.block_until_ready(out)

    ref = net50_reference(x, params)
    assert out.shape == (batch, D_OUT)
    assert out.dtype == jnp.float32
    # bf16 matmul inputs + bf16 output with f32 accumulation: tolerance
    # reflects bf16 rounding.
    err = float(jnp.max(jnp.abs(out - ref)))
    assert jnp.allclose(out, ref, atol=5e-2, rtol=5e-2), err

    print("KERNEL_OK")
</pallas_src>

<mosaic_0001>
module attributes {stable_mosaic.version = 11 : i64} {
  func.func @_net50_kernel(%arg0: i32, %arg1: memref<16x50xf32, #tpu.memory_space<vmem>>, %arg2: memref<50x200xbf16, #tpu.memory_space<vmem>>, %arg3: memref<1x200xbf16, #tpu.memory_space<vmem>>, %arg4: memref<200x200xbf16, #tpu.memory_space<vmem>>, %arg5: memref<1x200xbf16, #tpu.memory_space<vmem>>, %arg6: memref<200x200xbf16, #tpu.memory_space<vmem>>, %arg7: memref<1x200xbf16, #tpu.memory_space<vmem>>, %arg8: memref<200x128xbf16, #tpu.memory_space<vmem>>, %arg9: memref<1x128xbf16, #tpu.memory_space<vmem>>, %arg10: memref<16x128xbf16, #tpu.memory_space<vmem>>) attributes {dimension_semantics = [#tpu.dimension_semantics<parallel>], iteration_bounds = array<i64: 1>, scalar_prefetch = 0 : i64, scratch_operands = 0 : i64, tpu.core_type = #tpu.core_type<tc>, window_params = [{transform_indices = @transform_0, window_bounds = array<i64: 16, 50>}, {pipeline_mode = #tpu.pipeline_mode<synchronous>, transform_indices = @transform_1, window_bounds = array<i64: 50, 200>}, {pipeline_mode = #tpu.pipeline_mode<synchronous>, transform_indices = @transform_2, window_bounds = array<i64: 1, 200>}, {pipeline_mode = #tpu.pipeline_mode<synchronous>, transform_indices = @transform_3, window_bounds = array<i64: 200, 200>}, {pipeline_mode = #tpu.pipeline_mode<synchronous>, transform_indices = @transform_4, window_bounds = array<i64: 1, 200>}, {pipeline_mode = #tpu.pipeline_mode<synchronous>, transform_indices = @transform_5, window_bounds = array<i64: 200, 200>}, {pipeline_mode = #tpu.pipeline_mode<synchronous>, transform_indices = @transform_6, window_bounds = array<i64: 1, 200>}, {pipeline_mode = #tpu.pipeline_mode<synchronous>, transform_indices = @transform_7, window_bounds = array<i64: 200, 128>}, {pipeline_mode = #tpu.pipeline_mode<synchronous>, transform_indices = @transform_8, window_bounds = array<i64: 1, 128>}, {transform_indices = @transform_9, window_bounds = array<i64: 16, 128>}]} {
    %c0 = arith.constant 0 : index
    %c0_0 = arith.constant 0 : index
    %0 = vector.load %arg1[%c0, %c0_0] : memref<16x50xf32, #tpu.memory_space<vmem>>, vector<16x50xf32>
    %1 = arith.truncf %0 : vector<16x50xf32> to vector<16x50xbf16>
    %c0_1 = arith.constant 0 : index
    %c0_2 = arith.constant 0 : index
    %2 = vector.load %arg2[%c0_1, %c0_2] : memref<50x200xbf16, #tpu.memory_space<vmem>>, vector<50x200xbf16>
    %cst = arith.constant dense<0.000000e+00> : vector<16x200xf32>
    %3 = tpu.matmul %1, %2, %cst {dimension_numbers = #tpu.dot_dimension_numbers<[1], [0], [0], [1], [0, 0, 1, 1], [], []>} : vector<16x50xbf16>, vector<50x200xbf16>, vector<16x200xf32> -> vector<16x200xf32>
    %4 = arith.truncf %3 : vector<16x200xf32> to vector<16x200xbf16>
    %c0_3 = arith.constant 0 : index
    %c0_4 = arith.constant 0 : index
    %5 = vector.load %arg3[%c0_3, %c0_4] : memref<1x200xbf16, #tpu.memory_space<vmem>>, vector<1x200xbf16>
    %6 = vector.broadcast %5 : vector<1x200xbf16> to vector<16x200xbf16>
    %7 = arith.addf %4, %6 : vector<16x200xbf16>
    %cst_5 = arith.constant 0.000000e+00 : bf16
    %8 = vector.broadcast %cst_5 : bf16 to vector<16x200xbf16>
    %9 = arith.maximumf %7, %8 : vector<16x200xbf16>
    %c0_6 = arith.constant 0 : index
    %c0_7 = arith.constant 0 : index
    %10 = vector.load %arg4[%c0_6, %c0_7] : memref<200x200xbf16, #tpu.memory_space<vmem>>, vector<200x200xbf16>
    %cst_8 = arith.constant dense<0.000000e+00> : vector<16x200xf32>
    %11 = tpu.matmul %9, %10, %cst_8 {dimension_numbers = #tpu.dot_dimension_numbers<[1], [0], [0], [1], [0, 0, 1, 1], [], []>} : vector<16x200xbf16>, vector<200x200xbf16>, vector<16x200xf32> -> vector<16x200xf32>
    %12 = arith.truncf %11 : vector<16x200xf32> to vector<16x200xbf16>
    %c0_9 = arith.constant 0 : index
    %c0_10 = arith.constant 0 : index
    %13 = vector.load %arg5[%c0_9, %c0_10] : memref<1x200xbf16, #tpu.memory_space<vmem>>, vector<1x200xbf16>
    %14 = vector.broadcast %13 : vector<1x200xbf16> to vector<16x200xbf16>
    %15 = arith.addf %12, %14 : vector<16x200xbf16>
    %cst_11 = arith.constant 0.000000e+00 : bf16
    %16 = vector.broadcast %cst_11 : bf16 to vector<16x200xbf16>
    %17 = arith.maximumf %15, %16 : vector<16x200xbf16>
    %c0_12 = arith.constant 0 : index
    %c0_13 = arith.constant 0 : index
    %18 = vector.load %arg6[%c0_12, %c0_13] : memref<200x200xbf16, #tpu.memory_space<vmem>>, vector<200x200xbf16>
    %cst_14 = arith.constant dense<0.000000e+00> : vector<16x200xf32>
    %19 = tpu.matmul %17, %18, %cst_14 {dimension_numbers = #tpu.dot_dimension_numbers<[1], [0], [0], [1], [0, 0, 1, 1], [], []>} : vector<16x200xbf16>, vector<200x200xbf16>, vector<16x200xf32> -> vector<16x200xf32>
    %20 = arith.truncf %19 : vector<16x200xf32> to vector<16x200xbf16>
    %c0_15 = arith.constant 0 : index
    %c0_16 = arith.constant 0 : index
    %21 = vector.load %arg7[%c0_15, %c0_16] : memref<1x200xbf16, #tpu.memory_space<vmem>>, vector<1x200xbf16>
    %22 = vector.broadcast %21 : vector<1x200xbf16> to vector<16x200xbf16>
    %23 = arith.addf %20, %22 : vector<16x200xbf16>
    %cst_17 = arith.constant 0.000000e+00 : bf16
    %24 = vector.broadcast %cst_17 : bf16 to vector<16x200xbf16>
    %25 = arith.maximumf %23, %24 : vector<16x200xbf16>
    %c0_18 = arith.constant 0 : index
    %c0_19 = arith.constant 0 : index
    %26 = vector.load %arg8[%c0_18, %c0_19] : memref<200x128xbf16, #tpu.memory_space<vmem>>, vector<200x128xbf16>
    %cst_20 = arith.constant dense<0.000000e+00> : vector<16x128xf32>
    %27 = tpu.matmul %25, %26, %cst_20 {dimension_numbers = #tpu.dot_dimension_numbers<[1], [0], [0], [1], [0, 0, 1, 1], [], []>} : vector<16x200xbf16>, vector<200x128xbf16>, vector<16x128xf32> -> vector<16x128xf32>
    %28 = arith.truncf %27 : vector<16x128xf32> to vector<16x128xbf16>
    %c0_21 = arith.constant 0 : index
    %c0_22 = arith.constant 0 : index
    %29 = vector.load %arg9[%c0_21, %c0_22] : memref<1x128xbf16, #tpu.memory_space<vmem>>, vector<1x128xbf16>
    %30 = vector.broadcast %29 : vector<1x128xbf16> to vector<16x128xbf16>
    %31 = arith.addf %28, %30 : vector<16x128xbf16>
    %c0_23 = arith.constant 0 : index
    %c0_24 = arith.constant 0 : index
    %32 = vector.load %arg10[%c0_23, %c0_24] : memref<16x128xbf16, #tpu.memory_space<vmem>>, vector<16x128xbf16>
    tpu.vector_store %arg10[%c0_23, %c0_24], %31 {strides = array<i32>} : memref<16x128xbf16, #tpu.memory_space<vmem>>, vector<16x128xbf16>,
    return
  }
  func.func @transform_0(%arg0: i32) -> (i32, i32) {
    %c0_i32 = arith.constant 0 : i32
    %c0_i32_0 = arith.constant 0 : i32
    return %arg0, %c0_i32 : i32, i32
  }
  func.func @transform_1(%arg0: i32) -> (i32, i32) {
    %c0_i32 = arith.constant 0 : i32
    %c0_i32_0 = arith.constant 0 : i32
    %c0_i32_1 = arith.constant 0 : i32
    return %c0_i32, %c0_i32_0 : i32, i32
  }
  func.func @transform_2(%arg0: i32) -> (i32, i32) {
    %c0_i32 = arith.constant 0 : i32
    %c0_i32_0 = arith.constant 0 : i32
    %c0_i32_1 = arith.constant 0 : i32
    return %c0_i32, %c0_i32_0 : i32, i32
  }
  func.func @transform_3(%arg0: i32) -> (i32, i32) {
    %c0_i32 = arith.constant 0 : i32
    %c0_i32_0 = arith.constant 0 : i32
    %c0_i32_1 = arith.constant 0 : i32
    return %c0_i32, %c0_i32_0 : i32, i32
  }
  func.func @transform_4(%arg0: i32) -> (i32, i32) {
    %c0_i32 = arith.constant 0 : i32
    %c0_i32_0 = arith.constant 0 : i32
    %c0_i32_1 = arith.constant 0 : i32
    return %c0_i32, %c0_i32_0 : i32, i32
  }
  func.func @transform_5(%arg0: i32) -> (i32, i32) {
    %c0_i32 = arith.constant 0 : i32
    %c0_i32_0 = arith.constant 0 : i32
    %c0_i32_1 = arith.constant 0 : i32
    return %c0_i32, %c0_i32_0 : i32, i32
  }
  func.func @transform_6(%arg0: i32) -> (i32, i32) {
    %c0_i32 = arith.constant 0 : i32
    %c0_i32_0 = arith.constant 0 : i32
    %c0_i32_1 = arith.constant 0 : i32
    return %c0_i32, %c0_i32_0 : i32, i32
  }
  func.func @transform_7(%arg0: i32) -> (i32, i32) {
    %c0_i32 = arith.constant 0 : i32
    %c0_i32_0 = arith.constant 0 : i32
    %c0_i32_1 = arith.constant 0 : i32
    return %c0_i32, %c0_i32_0 : i32, i32
  }
  func.func @transform_8(%arg0: i32) -> (i32, i32) {
    %c0_i32 = arith.constant 0 : i32
    %c0_i32_0 = arith.constant 0 : i32
    %c0_i32_1 = arith.constant 0 : i32
    return %c0_i32, %c0_i32_0 : i32, i32
  }
  func.func @transform_9(%arg0: i32) -> (i32, i32) {
    %c0_i32 = arith.constant 0 : i32
    %c0_i32_0 = arith.constant 0 : i32
    return %arg0, %c0_i32 : i32, i32
  }
}

</mosaic_0001>

<bundles_post_ra>
// kernel: net50_forward_padded.1
= control target key start
LH: loop header
LB: loop body
LE: loop exit
PB: predicated region body
PF: predicated region fallthrough
CT: control target
= control target key end

     0   :  { %14 = vsyncpa [#allocation3], 0  ;;  %s1360_s0 = inlined_call_operand.vmem [shape: f32[16,50], index: 0, kind: input, shape index: {}]   ;;  %s1361_s1 = inlined_call_operand.hbm [shape: bf16[50,200], index: 1, kind: input, shape index: {}]   ;;  %s1362_s2 = inlined_call_operand.vmem [shape: bf16[1,200], index: 2, kind: input, shape index: {}]   ;;  %s1363_s3 = inlined_call_operand.hbm [shape: bf16[200,200], index: 3, kind: input, shape index: {}]   ;;  %s1364_s4 = inlined_call_operand.vmem [shape: bf16[1,200], index: 4, kind: input, shape index: {}]   ;;  %s1365_s5 = inlined_call_operand.hbm [shape: bf16[200,200], index: 5, kind: input, shape index: {}]   ;;  %s1366_s6 = inlined_call_operand.vmem [shape: bf16[1,200], index: 6, kind: input, shape index: {}]   ;;  %s1367_s7 = inlined_call_operand.hbm [shape: bf16[200,128], index: 7, kind: input, shape index: {}]   ;;  %s1368_s8 = inlined_call_operand.vmem [shape: bf16[1,128], index: 8, kind: input, shape index: {}]   ;;  %s1369_s9 = inlined_call_operand.hbm [shape: bf16[16,128], index: 9, kind: output, shape index: {}]  }
   0x1   :  { %15 = vsyncpa [#allocation6], 0 }
   0x2   :  { %16 = vsyncpa [#allocation9], 0 }
   0x3   :  { %17 = vsyncpa [#allocation4], 0  ;;  %s1215_s30 = smov [#allocation5]   ;;  %s1216_s11 = smov [#allocation2]  }
   0x4   :  { %s39_s10 = sshll.u32 %s1215_s30, 4  ;;  %s25_s12 = sshll.u32 %s1216_s11, 4  ;;  %s40_s10 = int_to_ptr.vmem [resolvable:$true] %s39_s10  ;;  %s26_s12 = int_to_ptr.vmem [resolvable:$true] %s25_s12 }
   0x5   :  { %s1115_s13 = scalar_lea.vmem %s40_s10, 3200  ;;  %p1120_p1 = scmp.lt.s32.totalorder %s40_s10, %s40_s10 }
   0x6   :  { %p1116_p0 = scmp.ne.s32.totalorder %s40_s10, %s1115_s13  ;;  %p1121_p2 = scmp.lt.s32.totalorder %s1115_s13, %s1115_s13 }
   0x8   :  { %p1122_p3 = por %p1121_p2, %p1120_p1 }
   0xa   :  { %p1123_p4 = pnand %p1122_p3, %p1116_p0 }
   0xc   :  { %1126 = shalt.err (!%p1123_p4)
}
   0xd   :  { %s1217_s14 = smov 128   ;;  %s1218_s15 = smov 8  }
   0xe   :  { %45 = dma.hbm_to_vmem [thread:$0]  %s1363_s3, 3200, %s40_s10, [#allocation6], %s1217_s14, %s1217_s14, %s1218_s15  }
   0xf   :  { %s1135_s18 = scalar_lea.vmem %s26_s12, 896  ;;  %p1140_p6 = scmp.lt.s32.totalorder %s26_s12, %s26_s12 }
  0x10   :  { %p1136_p5 = scmp.ne.s32.totalorder %s26_s12, %s1135_s18  ;;  %p1141_p7 = scmp.lt.s32.totalorder %s1135_s18, %s1135_s18 }
  0x12   :  { %p1142_p8 = por %p1141_p7, %p1140_p6 }
  0x14   :  { %p1143_p9 = pnand %p1142_p8, %p1136_p5 }
  0x16   :  { %1146 = shalt.err (!%p1143_p9)
}
  0x17   :  { %31 = dma.hbm_to_vmem [thread:$0]  %s1361_s1, 896, %s26_s12, [#allocation3], %s1217_s14, %s1217_s14, %s1218_s15  }
  0x18   :  { %s1219_s21 = smov [#allocation7]   ;;  %s1220_s23 = smov [#allocation8]  }
  0x19   :  { %s53_s22 = sshll.u32 %s1219_s21, 4  ;;  %s67_s24 = sshll.u32 %s1220_s23, 4  ;;  %s54_s22 = int_to_ptr.vmem [resolvable:$true] %s53_s22  ;;  %s68_s24 = int_to_ptr.vmem [resolvable:$true] %s67_s24 }
  0x1a   :  { %s1155_s25 = scalar_lea.vmem %s54_s22, 3200  ;;  %p1160_p11 = scmp.lt.s32.totalorder %s54_s22, %s54_s22 }
  0x1b   :  { %p1156_p10 = scmp.ne.s32.totalorder %s54_s22, %s1155_s25  ;;  %p1161_p12 = scmp.lt.s32.totalorder %s1155_s25, %s1155_s25 }
  0x1d   :  { %p1162_p13 = por %p1161_p12, %p1160_p11 }
  0x1f   :  { %p1163_p0 = pnand %p1162_p13, %p1156_p10 }
  0x21   :  { %1166 = shalt.err (!%p1163_p0)
}
  0x22   :  { %59 = dma.hbm_to_vmem [thread:$0]  %s1365_s5, 3200, %s54_s22, [#allocation6], %s1217_s14, %s1217_s14, %s1218_s15  }
  0x23   :  { %s1175_s27 = scalar_lea.vmem %s68_s24, 1600  ;;  %p1180_p2 = scmp.lt.s32.totalorder %s68_s24, %s68_s24 }
  0x24   :  { %p1176_p1 = scmp.ne.s32.totalorder %s68_s24, %s1175_s27  ;;  %p1181_p3 = scmp.lt.s32.totalorder %s1175_s27, %s1175_s27 }
  0x26   :  { %p1182_p4 = por %p1181_p3, %p1180_p2 }
  0x28   :  { %p1183_p5 = pnand %p1182_p4, %p1176_p1 }
  0x2a   :  { %1186 = shalt.err (!%p1183_p5)
}
  0x2b   :  { %s1221_s1 = smov 64   ;;  %s1222_s28 = smov 4  }
  0x2c   :  { %73 = dma.hbm_to_vmem [thread:$0]  %s1367_s7, 1600, %s68_s24, [#allocation9], %s1221_s1, %s1221_s1, %s1222_s28  }
  0x2d   :  { %1207 = dma.done.wait [#allocation3], 896  }
  0x2e   :  { %1208 = vsyncadd [#allocation3], 4294966400 }
  0x2f   :  { %1209 = dma.done.wait [#allocation6], 6400  }
  0x30   :  { %1210 = vsyncadd [#allocation6], 4294960896 }
  0x31   :  { %1211 = dma.done.wait [#allocation9], 1600  }
  0x32   :  { %1212 = vsyncadd [#allocation9], 4294965696  ;;  %v1223_v0 = vmov 0   ;;  %v98_v1 = vld [vmem:[#allocation2 + $0x30] sm:$0x11]  ;;  %vm138_vm0 = vcmask 1040384  }
  0x33   :  { %177 = vmatprep.mubr.bf16.mxu0 %v1223_v0  ;;  %v918_v2 = vcombine.high %v98_v1, %v98_v1  ;;  %v917_v3 = vcombine.low %v98_v1, %v98_v1  ;;  %v1009_v4 = vld [vmem:[#allocation2 + $0x24] ss:$8 sps:$4 sm:$0xff]   ;;  %v1011_v6 = vld [vmem:[#allocation2 + $0x20] ss:$8 sps:$4 sm:$0xff]   ;;  %v1012_v7 = vld [vmem:[#allocation2 + $0x14] ss:$8 sps:$4 sm:$0xff]  }
  0x34   :  { %v1018_v8 = vld [vmem:[#allocation5 + $0x74] ss:$8 sps:$4 sm:$0xff]   ;;  %v1020_v9 = vld [vmem:[#allocation5 + $0x70] ss:$8 sps:$4 sm:$0xff]   ;;  %v1021_v11 = vld [vmem:[#allocation5 + $0x64] ss:$8 sps:$4 sm:$0xff]  }
  0x35   :  { %919 = vmatprep.subr.msk.bf16.mxu0 %vm138_vm0, %v918_v2  ;;  %v140_v5 = vsel %vm138_vm0, %v917_v3, 0  ;;  %v1014_v10 = vld [vmem:[#allocation2 + $0x10] ss:$8 sps:$4 sm:$0xff]   ;;  %393 = vmatprep.subr.bf16.mxu1 %v1018_v8  ;;  %v1015_v12 = vld [vmem:[#allocation2 + $0x4] ss:$8 sps:$4 sm:$0xff]   ;;  %vm134_vm1 = vcmask 408576   ;;  %v203_v3 = vlaneseq }
  0x36   :  { %154 = vmatpush1.bf16.msra.mxu0 %v140_v5  ;;  %394 = vmatpush1.bf16.msra.mxu1 %v1020_v9  ;;  %v1023_v13 = vld [vmem:[#allocation5 + $0x60] ss:$8 sps:$4 sm:$0xff]   ;;  %v1024_v14 = vld [vmem:[#allocation5 + $0x54] ss:$8 sps:$4 sm:$0xff]   ;;  %v1026_v18 = vld [vmem:[#allocation5 + $0x50] ss:$8 sps:$4 sm:$0xff]  }
  0x37   :  { %155 = vmatprep.subr.bf16.mxu0 %v1009_v4  ;;  %395 = vmatprep.subr.bf16.mxu1 %v1021_v11  ;;  %v1017_v15 = vld [vmem:[#allocation2] ss:$8 sps:$4 sm:$0xff]   ;;  %v1027_v19 = vld [vmem:[#allocation5 + $0x44] ss:$8 sps:$4 sm:$0xff]   ;;  %v1030_v22 = vld [vmem:[#allocation5 + $0x34] ss:$8 sps:$4 sm:$0xff]  }
  0x38   :  { %v89_v16 = vld [vmem:[%s1360_s0] sm:$0xff]  ;;  %v90_v17 = vld [vmem:[%s1360_s0 + $0x8] sm:$0xff]  ;;  %vm386_vm2 = vcmask 1043456   ;;  %v256_v29 = vld [vmem:[#allocation5 + $0xc0] sm:$0xff]  ;;  %v1224_v1 = vmov 1966171168  }
  0x39   :  { %v91_v20 = vpack.c.bf16 %v90_v17, %v89_v16  ;;  %v1029_v21 = vld [vmem:[#allocation5 + $0x40] ss:$8 sps:$4 sm:$0xff]   ;;  %v1032_v23 = vld [vmem:[#allocation5 + $0x30] ss:$8 sps:$4 sm:$0xff]   ;;  %v1033_v24 = vld [vmem:[#allocation5 + $0x24] ss:$8 sps:$4 sm:$0xff]   ;;  %v947_v31 = vcombine.high %v256_v29, %v256_v29  ;;  %v946_v32 = vcombine.low %v256_v29, %v256_v29  ;;  %v201_v2 = vunpack.c.l.s4 %v1224_v1 }
  0x3a   :  { %156 = vmatpush1.bf16.msra.mxu0 %v1011_v6  ;;  %396 = vmatpush1.bf16.msra.mxu1 %v1023_v13  ;;  %v1035_v25 = vld [vmem:[#allocation5 + $0x20] ss:$8 sps:$4 sm:$0xff]   ;;  %v1036_v26 = vld [vmem:[#allocation5 + $0x14] ss:$8 sps:$4 sm:$0xff]   ;;  %v1038_v27 = vld [vmem:[#allocation5 + $0x10] ss:$8 sps:$4 sm:$0xff]  }
  0x3b   :  { %157 = vmatprep.subr.bf16.mxu0 %v1012_v7  ;;  %397 = vmatprep.subr.bf16.mxu1 %v1024_v14  ;;  %v1039_v28 = vld [vmem:[#allocation5 + $0x4] ss:$8 sps:$4 sm:$0xff]   ;;  %v1041_v30 = vld [vmem:[#allocation5] ss:$8 sps:$4 sm:$0xff]   ;;  %v388_v33 = vsel %vm386_vm2, %v946_v32, 0  ;;  %v202_v4 = vunpack.c.0.s8 %v201_v2  ;;  %v204_v5 = vshrl.u32 %v203_v3, 7 }
  0x3c   :  { %v1044_v34 = vld [vmem:[#allocation5 + $0xb4] ss:$8 sps:$4 sm:$0xff]   ;;  %v1046_v35 = vld [vmem:[#allocation5 + $0xb0] ss:$8 sps:$4 sm:$0xff]   ;;  %v1047_v36 = vld [vmem:[#allocation5 + $0xa4] ss:$8 sps:$4 sm:$0xff]  }
  0x3d   :  { %v1049_v37 = vld [vmem:[#allocation5 + $0xa0] ss:$8 sps:$4 sm:$0xff]   ;;  %v1050_v38 = vld [vmem:[#allocation5 + $0x94] ss:$8 sps:$4 sm:$0xff]   ;;  %v1052_v39 = vld [vmem:[#allocation5 + $0x90] ss:$8 sps:$4 sm:$0xff]   ;;  %v1306_v7 = vsub.s32 %v202_v4, %v204_v5 }
  0x3e   :  { %158 = vmatpush1.bf16.msra.mxu0 %v1014_v10  ;;  %398 = vmatpush1.bf16.msra.mxu1 %v1026_v18  ;;  %v1053_v40 = vld [vmem:[#allocation5 + $0x84] ss:$8 sps:$4 sm:$0xff]   ;;  %v1055_v41 = vld [vmem:[#allocation5 + $0x80] ss:$8 sps:$4 sm:$0xff]   ;;  %v1310_v13 = vsub.s32 0, %v204_v5  ;;  %vm382_vm3 = vcmask 588800  }
  0x3f   :  { %159 = vmatprep.subr.bf16.mxu0 %v1015_v12  ;;  %399 = vmatprep.subr.bf16.mxu1 %v1027_v19  ;;  %v1056_v42 = vld [vmem:[#allocation7 + $0x70] ss:$8 sps:$4 sm:$0xff]   ;;  %v1058_v43 = vld [vmem:[#allocation7 + $0x74] ss:$8 sps:$4 sm:$0xff]   ;;  %v1061_v44 = vld [vmem:[#allocation7 + $0x64] ss:$8 sps:$4 sm:$0xff]  }
  0x40   :  { %v1059_v45 = vld [vmem:[#allocation7 + $0x60] ss:$8 sps:$4 sm:$0xff]   ;;  %v1064_v46 = vld [vmem:[#allocation7 + $0x54] ss:$8 sps:$4 sm:$0xff]   ;;  %v1062_v47 = vld [vmem:[#allocation7 + $0x50] ss:$8 sps:$4 sm:$0xff]  }
  0x41   :  { %v1067_v48 = vld [vmem:[#allocation7 + $0x44] ss:$8 sps:$4 sm:$0xff]   ;;  %v1065_v49 = vld [vmem:[#allocation7 + $0x40] ss:$8 sps:$4 sm:$0xff]   ;;  %v1070_v50 = vld [vmem:[#allocation7 + $0x34] ss:$8 sps:$4 sm:$0xff]  }
  0x42   :  { %160 = vmatpush1.bf16.msra.mxu0 %v1017_v15  ;;  %400 = vmatpush1.bf16.msra.mxu1 %v1029_v21  ;;  %v1068_v51 = vld [vmem:[#allocation7 + $0x30] ss:$8 sps:$4 sm:$0xff]   ;;  %v1073_v52 = vld [vmem:[#allocation7 + $0x24] ss:$8 sps:$4 sm:$0xff]   ;;  %v1071_v53 = vld [vmem:[#allocation7 + $0x20] ss:$8 sps:$4 sm:$0xff]  }
  0x43   :  { %401 = vmatprep.subr.bf16.mxu1 %v1030_v22  ;;  %639 = vmatprep.subr.bf16.mxu0 %v1058_v43  ;;  %v1076_v54 = vld [vmem:[#allocation7 + $0x14] ss:$8 sps:$4 sm:$0xff]   ;;  %v1074_v55 = vld [vmem:[#allocation7 + $0x10] ss:$8 sps:$4 sm:$0xff]   ;;  %v1079_v56 = vld [vmem:[#allocation7 + $0x4] ss:$8 sps:$4 sm:$0xff]  }
  0x44   :  { %v504_v57 = vld [vmem:[#allocation7 + $0xc0] sm:$0xff]  ;;  %v1084_v62 = vld [vmem:[#allocation7 + $0xb4] ss:$8 sps:$4 sm:$0xff]   ;;  %v1082_v63 = vld [vmem:[#allocation7 + $0xb0] ss:$8 sps:$4 sm:$0xff]   ;;  %s1225_s16 = smov [#allocation10]  }
  0x45   :  { %920 = vmatmul.mubr.msk.bf16.vlgmr.msra.gmra.mxu0 %vm134_vm1, %v91_v20  ;;  %v1077_v58 = vld [vmem:[#allocation7] ss:$8 sps:$4 sm:$0xff]   ;;  %v976_v59 = vcombine.high %v504_v57, %v504_v57  ;;  %v975_v60 = vcombine.low %v504_v57, %v504_v57  ;;  %v1088_v29 = vld [vmem:[#allocation7 + $0x90] ss:$8 sps:$4 sm:$0xff]   ;;  %s897_s17 = sshll.u32 %s1225_s16, 4  ;;  %s898_s17 = int_to_ptr.vmem [resolvable:$true] %s897_s17 }
  0x46   :  { %402 = vmatpush1.bf16.msra.mxu1 %v1032_v23  ;;  %640 = vmatpush1.bf16.msra.mxu0 %v1056_v42  ;;  %v921_v6 = vld.sshfl [vmem:[%s1362_s2] sm:$0x11 pattern:$0x75316420]  ;;  %s1187_s18 = scalar_lea.vmem %s898_s17, 128  ;;  %p1192_p7 = scmp.lt.s32.totalorder %s898_s17, %s898_s17 }
  0x47   :  { %403 = vmatprep.subr.bf16.mxu1 %v1033_v24  ;;  %641 = vmatprep.subr.bf16.mxu0 %v1061_v44  ;;  %v634_v61 = vsel %vm386_vm2, %v975_v60, 0  ;;  %v199_v8 = vcombine.high %v921_v6, %v921_v6  ;;  %v206_v9 = vrot.slane %v921_v6, %v1306_v7  ;;  %v1094_v32 = vld [vmem:[#allocation8 + $0x38] sm:$0xff]   ;;  %p1188_p6 = scmp.ne.s32.totalorder %s898_s17, %s1187_s18  ;;  %p1193_p8 = scmp.lt.s32.totalorder %s1187_s18, %s1187_s18 }
  0x48   :  { %v1103_v42 = vld [vmem:[#allocation8 + $0x58] sm:$0xff]  }
  0x49   :  { %v213_v10 = vrot.slane %v199_v8, %v1306_v7  ;;  %v215_v12 = vpack.i.b16 %v206_v9, %v206_v9  ;;  %v950_v43 = vld.sshfl [vmem:[%s1364_s4] sm:$0x11 pattern:$0x75316420]  ;;  %p1194_p9 = por %p1193_p8, %p1192_p7 }
  0x4a   :  { %404 = vmatpush1.bf16.msra.mxu1 %v1035_v25  ;;  %642 = vmatpush1.bf16.msra.mxu0 %v1059_v45  ;;  %v447_v44 = vcombine.high %v950_v43, %v950_v43  ;;  %v454_v45 = vrot.slane %v950_v43, %v1306_v7  ;;  %v979_v1 = vld.sshfl [vmem:[%s1366_s6] sm:$0x11 pattern:$0x75316420] }
  0x4b   :  { %405 = vmatprep.subr.bf16.mxu1 %v1036_v26  ;;  %643 = vmatprep.subr.bf16.mxu0 %v1064_v46  ;;  %v222_v14 = vpack.i.b16 %v213_v10, %v213_v10  ;;  %v220_v17 = vrot.slane %v215_v12, %v1310_v13  ;;  %v1087_v26 = vld [vmem:[#allocation7 + $0xa4] ss:$8 sps:$4 sm:$0xff]   ;;  %v693_v2 = vcombine.high %v979_v1, %v979_v1  ;;  %p1195_p10 = pnand %p1194_p9, %p1188_p6 }
  0x4c   :  { %v461_v46 = vrot.slane %v447_v44, %v1306_v7  ;;  %v700_v3 = vrot.slane %v979_v1, %v1306_v7 }
  0x4d   :  { %v227_v19 = vrot.slane %v222_v14, %v1310_v13  ;;  %v707_v4 = vrot.slane %v693_v2, %v1306_v7  ;;  %v874_v7 = vld [vmem:[%s1368_s8] sm:$0x1] }
  0x4e   :  { %406 = vmatpush1.bf16.msra.mxu1 %v1038_v27  ;;  %644 = vmatpush1.bf16.msra.mxu0 %v1062_v47  ;;  %v1085_v27 = vld [vmem:[#allocation7 + $0xa0] ss:$8 sps:$4 sm:$0xff]   ;;  %v709_v6 = vpack.i.b16 %v700_v3, %v700_v3 }
  0x4f   :  { %407 = vmatprep.subr.bf16.mxu1 %v1039_v28  ;;  %645 = vmatprep.subr.bf16.mxu0 %v1067_v48  ;;  %v1090_v28 = vld [vmem:[#allocation7 + $0x94] ss:$8 sps:$4 sm:$0xff]   ;;  %v463_v48 = vpack.i.b16 %v454_v45, %v454_v45  ;;  %v716_v8 = vpack.i.b16 %v707_v4, %v707_v4 }
  0x51   :  { %v721_v14 = vrot.slane %v716_v8, %v1310_v13 }
  0x52   :  { %408 = vmatpush1.bf16.msra.mxu1 %v1041_v30  ;;  %646 = vmatpush1.bf16.msra.mxu0 %v1065_v49  ;;  %v1093_v30 = vld [vmem:[#allocation7 + $0x84] ss:$8 sps:$4 sm:$0xff]   ;;  %v470_v49 = vpack.i.b16 %v461_v46, %v461_v46 }
  0x53   :  { %948 = vmatprep.subr.msk.bf16.mxu1 %vm386_vm2, %v947_v31  ;;  %647 = vmatprep.subr.bf16.mxu0 %v1070_v50  ;;  %v1091_v31 = vld [vmem:[#allocation7 + $0x80] ss:$8 sps:$4 sm:$0xff]  }
  0x56   :  { %416 = vmatpush2.bf16.msra.mxu1 %v388_v33  ;;  %648 = vmatpush1.bf16.msra.mxu0 %v1068_v51  ;;  %v1095_v33 = vld [vmem:[#allocation8 + $0x30] sm:$0xff]  }
  0x57   :  { %417 = vmatprep.subr.bf16.mxu1 %v1044_v34  ;;  %649 = vmatprep.subr.bf16.mxu0 %v1073_v52  ;;  %v1096_v34 = vld [vmem:[#allocation8 + $0x28] sm:$0xff]   ;;  %v468_v52 = vrot.slane %v463_v48, %v1310_v13 }
  0x5a   :  { %418 = vmatpush2.bf16.msra.mxu1 %v1046_v35  ;;  %650 = vmatpush1.bf16.msra.mxu0 %v1071_v53  ;;  %v1097_v35 = vld [vmem:[#allocation8 + $0x20] sm:$0xff]  }
  0x5b   :  { %419 = vmatprep.subr.bf16.mxu1 %v1047_v36  ;;  %651 = vmatprep.subr.bf16.mxu0 %v1076_v54  ;;  %v1098_v36 = vld [vmem:[#allocation8 + $0x18] sm:$0xff]   ;;  %v475_v54 = vrot.slane %v470_v49, %v1310_v13 }
  0x5e   :  { %420 = vmatpush2.bf16.msra.mxu1 %v1049_v37  ;;  %652 = vmatpush1.bf16.msra.mxu0 %v1074_v55  ;;  %v1099_v37 = vld [vmem:[#allocation8 + $0x10] sm:$0xff]  }
  0x5f   :  { %421 = vmatprep.subr.bf16.mxu1 %v1050_v38  ;;  %653 = vmatprep.subr.bf16.mxu0 %v1079_v56  ;;  %v1100_v38 = vld [vmem:[#allocation8 + $0x8] sm:$0xff]  }
  0x62   :  { %422 = vmatpush2.bf16.msra.mxu1 %v1052_v39  ;;  %654 = vmatpush1.bf16.msra.mxu0 %v1077_v58  ;;  %v1101_v39 = vld [vmem:[#allocation8] sm:$0xff]  }
  0x63   :  { %423 = vmatprep.subr.bf16.mxu1 %v1053_v40  ;;  %977 = vmatprep.subr.msk.bf16.mxu0 %vm386_vm2, %v976_v59  ;;  %v1102_v40 = vld [vmem:[#allocation8 + $0x60] ss:$0 sps:$4 sm:$0xff]  }
  0x66   :  { %424 = vmatpush2.bf16.msra.mxu1 %v1055_v41  ;;  %662 = vmatpush2.bf16.msra.mxu0 %v634_v61  ;;  %v830_v41 = vsel %vm386_vm2, %v1102_v40, 0  ;;  %v1104_v61 = vld [vmem:[#allocation8 + $0x50] sm:$0xff]  }
  0x67   :  { %832 = vmatprep.subr.bf16.mxu1 %v1223_v0  ;;  %663 = vmatprep.subr.bf16.mxu0 %v1084_v62  ;;  %v1105_v62 = vld [vmem:[#allocation8 + $0x48] sm:$0xff]  }
  0x6a   :  { %664 = vmatpush2.bf16.msra.mxu0 %v1082_v63  ;;  %v1106_v63 = vld [vmem:[#allocation8 + $0x40] sm:$0xff]  }
  0x6b   :  { %665 = vmatprep.subr.bf16.mxu0 %v1087_v26 }
  0x6e   :  { %666 = vmatpush2.bf16.msra.mxu0 %v1085_v27 }
  0x6f   :  { %667 = vmatprep.subr.bf16.mxu0 %v1090_v28 }
  0x72   :  { %668 = vmatpush2.bf16.msra.mxu0 %v1088_v29 }
  0x73   :  { %669 = vmatprep.subr.bf16.mxu0 %v1093_v30 }
  0x76   :  { %670 = vmatpush2.bf16.msra.mxu0 %v1091_v31 }
 0x105   :  { %v179_v11 = vpop.f32.mrf.mxu0 }
 0x107   :  { %v181_v15 = vpop.f32.mrf.mxu0 }
 0x109   :  { %v183_v16 = vpop.f32.mrf.mxu0 }
 0x10a   :  { %v188_v18 = vpack.c.bf16 %v183_v16, %v179_v11  ;;  %v714_v11 = vrot.slane %v709_v6, %v1310_v13 }
 0x10b   :  { %v185_v20 = vpop.f32.mrf.mxu0 }
 0x10c   :  { %v189_v21 = vpack.c.bf16 %v185_v20, %v181_v15  ;;  %v228_v22 = vadd.bf16 %v220_v17, %v188_v18 }
 0x10e   :  { %v229_v23 = vadd.bf16 %v227_v19, %v189_v21  ;;  %v230_v25 = vmax.bf16 %v1223_v0, %v228_v22  ;;  %v876_v21 = vpack.i.b16 %v874_v7, %v874_v7 }
 0x110   :  { %v231_v24 = vmax.bf16 %v1223_v0, %v229_v23 }
 0x112   :  { %949 = vmatprep.mubr.msk.bf16.mxu1 %vm382_vm3, %v231_v24  ;;  %v881_v24 = vrot.slane %v876_v21, %v1310_v13 }
 0x113   :  { %426 = vmatmul.mubr.bf16.vlgmr.msra.gmra.mxu1 %v230_v25 }
 0x114   :  { %833 = vmatpush1.bf16.msra.mxu1 %v1094_v32 }
 0x115   :  { %834 = vmatprep.subr.bf16.mxu1 %v1223_v0 }
 0x118   :  { %835 = vmatpush1.bf16.msra.mxu1 %v1095_v33 }
 0x119   :  { %836 = vmatprep.subr.bf16.mxu1 %v1223_v0 }
 0x11c   :  { %837 = vmatpush1.bf16.msra.mxu1 %v1096_v34 }
 0x11d   :  { %838 = vmatprep.subr.bf16.mxu1 %v1223_v0 }
 0x120   :  { %839 = vmatpush1.bf16.msra.mxu1 %v1097_v35 }
 0x121   :  { %840 = vmatprep.subr.bf16.mxu1 %v1223_v0 }
 0x124   :  { %841 = vmatpush1.bf16.msra.mxu1 %v1098_v36 }
 0x125   :  { %842 = vmatprep.subr.bf16.mxu1 %v1223_v0 }
 0x128   :  { %843 = vmatpush1.bf16.msra.mxu1 %v1099_v37 }
 0x129   :  { %844 = vmatprep.subr.bf16.mxu1 %v1223_v0 }
 0x12c   :  { %845 = vmatpush1.bf16.msra.mxu1 %v1100_v38 }
 0x12d   :  { %846 = vmatprep.subr.bf16.mxu1 %v1223_v0 }
 0x130   :  { %847 = vmatpush1.bf16.msra.mxu1 %v1101_v39 }
 0x131   :  { %854 = vmatprep.subr.bf16.mxu1 %v1223_v0 }
 0x134   :  { %855 = vmatpush2.bf16.msra.mxu1 %v830_v41 }
 0x135   :  { %856 = vmatprep.subr.bf16.mxu1 %v1223_v0 }
 0x138   :  { %857 = vmatpush2.bf16.msra.mxu1 %v1103_v42 }
 0x139   :  { %858 = vmatprep.subr.bf16.mxu1 %v1223_v0 }
 0x13c   :  { %859 = vmatpush2.bf16.msra.mxu1 %v1104_v61 }
 0x13d   :  { %860 = vmatprep.subr.bf16.mxu1 %v1223_v0 }
 0x140   :  { %861 = vmatpush2.bf16.msra.mxu1 %v1105_v62 }
 0x141   :  { %862 = vmatprep.subr.bf16.mxu1 %v1223_v0 }
 0x144   :  { %863 = vmatpush2.bf16.msra.mxu1 %v1106_v63 }
 0x1d3   :  { %v427_v47 = vpop.f32.mrf.mxu1 }
 0x1d5   :  { %v429_v50 = vpop.f32.mrf.mxu1 }
 0x1d7   :  { %v431_v51 = vpop.f32.mrf.mxu1 }
 0x1d8   :  { %v436_v53 = vpack.c.bf16 %v431_v51, %v427_v47 }
 0x1d9   :  { %v433_v55 = vpop.f32.mrf.mxu1 }
 0x1da   :  { %v437_v56 = vpack.c.bf16 %v433_v55, %v429_v50  ;;  %v476_v57 = vadd.bf16 %v468_v52, %v436_v53 }
 0x1dc   :  { %v477_v58 = vadd.bf16 %v475_v54, %v437_v56  ;;  %v478_v60 = vmax.bf16 %v1223_v0, %v476_v57 }
 0x1de   :  { %v479_v59 = vmax.bf16 %v1223_v0, %v477_v58 }
 0x1e0   :  { %978 = vmatprep.mubr.msk.bf16.mxu0 %vm382_vm3, %v479_v59 }
 0x1e1   :  { %672 = vmatmul.mubr.bf16.vlgmr.msra.gmra.mxu0 %v478_v60 }
 0x2a1   :  { %v673_v5 = vpop.f32.mrf.mxu0 }
 0x2a3   :  { %v675_v9 = vpop.f32.mrf.mxu0 }
 0x2a5   :  { %v677_v10 = vpop.f32.mrf.mxu0 }
 0x2a6   :  { %v682_v12 = vpack.c.bf16 %v677_v10, %v673_v5 }
 0x2a7   :  { %v679_v15 = vpop.f32.mrf.mxu0 }
 0x2a8   :  { %v683_v16 = vpack.c.bf16 %v679_v15, %v675_v9  ;;  %v722_v17 = vadd.bf16 %v714_v11, %v682_v12 }
 0x2aa   :  { %v723_v18 = vadd.bf16 %v721_v14, %v683_v16  ;;  %v724_v20 = vmax.bf16 %v1223_v0, %v722_v17 }
 0x2ac   :  { %v725_v19 = vmax.bf16 %v1223_v0, %v723_v18 }
 0x2ae   :  { %993 = vmatprep.mubr.msk.bf16.mxu1 %vm382_vm3, %v725_v19 }
 0x2af   :  { %865 = vmatmul.mubr.bf16.vlgmr.msra.gmra.mxu1 %v724_v20 }
 0x36f   :  { %v866_v22 = vpop.f32.mrf.mxu1 }
 0x371   :  { %v868_v23 = vpop.f32.mrf.mxu1 }
 0x373   :  { %v869_v25 = vpop.f32.mrf.mxu1 }
 0x374   :  { %v873_v26 = vpack.c.bf16 %v869_v25, %v866_v22 }
 0x375   :  { %v871_v27 = vpop.f32.mrf.mxu1 }
 0x376   :  { %v882_v28 = vadd.bf16 %v881_v24, %v873_v26 }
 0x378   :  { %v994_v29 = vcombine.low %v882_v28, %v882_v28  ;;  %v995_v0 = vcombine.high %v882_v28, %v882_v28 }
 0x37a   :  { %890 = vst [vmem:[#allocation10] sm:$0xf] %v994_v29  ;;  %891 = vst [vmem:[#allocation10 + $0x4] sm:$0xf] %v995_v0 }
 0x37b   :  { %1198 = shalt.err (!%p1195_p10)
}
 0x37c   :  { %903 = dma.vmem_to_hbm [thread:$0]  %s898_s17, 128, %s1369_s9, [#allocation4], %s1221_s1, %s1221_s1, %s1222_s28  }
 0x37d   :  { %1213 = dma.done.wait [#allocation4], 128  }
 0x37e   :  { %1214 = vsyncadd [#allocation4], 4294967168 }
 0x37f   :  { %907 = vsyncpa [#allocation3], 1 }
 0x380   :  { %908 = vsyncpa [#allocation6], 1 }
 0x381   :  { %909 = vsyncpa [#allocation9], 1 }
 0x382   :  { %910 = vsyncpa [#allocation4], 1 }

</bundles_post_ra>
